<compile_context>
chip_gen: v5e
topology: v5e:2x2
jax: 0.10.0
libtpu: 0.0.40
codegen_flags: <defaults>
</compile_context>

<pallas_src>
import jax
import jax.numpy as jnp
from jax.experimental import pallas as pl
from jax.experimental.pallas import tpu as pltpu


_NEG_SLOPE = 0.01  # nn.LeakyReLU() default negative_slope


def _leaky_relu(h):
    return jnp.where(h > 0, h, _NEG_SLOPE * h)


def _round_up(x, m):
    return ((x + m - 1) // m) * m


# ---------------------------------------------------------------------------
# Kernel
# ---------------------------------------------------------------------------
def actor_kernel(x_ref,
                 w1_ref, b1_ref,
                 w2_ref, b2_ref,
                 w4_ref, b4_ref,
                 w5_ref, b5_ref,
                 o_ref):
    # Matmul operands carry the weight dtype (bf16 by default) so every dot
    # hits the MXU-native path with f32 accumulation; biases and the activation
    # chain stay f32.  All feature dims except fc1's K are padded to multiples
    # of 128 by the wrapper, so every vreg and the output store are lane-dense.
    h = jnp.dot(x_ref[...], w1_ref[...],
                preferred_element_type=jnp.float32) + b1_ref[...]
    h = _leaky_relu(h)

    h = jnp.dot(h.astype(w2_ref.dtype), w2_ref[...],
                preferred_element_type=jnp.float32) + b2_ref[...]
    h = _leaky_relu(h)

    h = jnp.dot(h.astype(w4_ref.dtype), w4_ref[...],
                preferred_element_type=jnp.float32) + b4_ref[...]
    h = _leaky_relu(h)

    h = jnp.dot(h.astype(w5_ref.dtype), w5_ref[...],
                preferred_element_type=jnp.float32) + b5_ref[...]

    # Sigmoid epilogue on the EUP (exp) path; lane-dense output block.
    o_ref[...] = jax.nn.sigmoid(h).astype(o_ref.dtype)


# ---------------------------------------------------------------------------
# One-time parameter preparation (hoisted out of the per-call forward path)
# ---------------------------------------------------------------------------
def prepare_actor_params(raw, *, param_dtype=jnp.bfloat16):
    """Cast weights to the MXU operand dtype and zero-pad every layer-output
    feature dim (hidden, middle, num_actions) up to a multiple of 128.  Do this
    once at init; actor_forward then consumes the prepared dict directly."""
    num_states, hidden = raw["w1"].shape
    middle = raw["w2"].shape[1]
    num_actions = raw["w5"].shape[1]

    hid_p = _round_up(hidden, 128)
    mid_p = _round_up(middle, 128)
    act_p = _round_up(num_actions, 128)

    def pad2(a, rows, cols):
        a = jnp.asarray(a, jnp.float32)
        return jnp.pad(a, ((0, rows - a.shape[0]), (0, cols - a.shape[1])))

    return {
        "w1": pad2(raw["w1"], num_states, hid_p).astype(param_dtype),
        "b1": pad2(raw["b1"].reshape(1, -1), 1, hid_p),
        "w2": pad2(raw["w2"], hid_p, mid_p).astype(param_dtype),
        "b2": pad2(raw["b2"].reshape(1, -1), 1, mid_p),
        "w4": pad2(raw["w4"], mid_p, hid_p).astype(param_dtype),
        "b4": pad2(raw["b4"].reshape(1, -1), 1, hid_p),
        "w5": pad2(raw["w5"], hid_p, act_p).astype(param_dtype),
        "b5": pad2(raw["b5"].reshape(1, -1), 1, act_p),
        "dims": dict(num_states=num_states, hidden=hidden, middle=middle,
                     num_actions=num_actions,
                     hidden_p=hid_p, middle_p=mid_p, num_actions_p=act_p),
    }


def _default_batch_tile(B):
    # The grid is a serial loop on single-TensorCore chips (v5e/v6e): one step
    # whenever the whole batch fits a reasonable tile; only very large batches
    # split (big tiles reach a much larger fraction of HBM roofline).  Tiles
    # are multiples of 16 rows so bf16 M-axis vregs are fully packed.
    # On the 2-TC v7x, pass batch_tile explicitly so grid_b is even and each
    # core gets >=2 steps for DMA/compute overlap.
    return min(512, _round_up(max(B, 16), 16))


# ---------------------------------------------------------------------------
# Forward wrapper
# ---------------------------------------------------------------------------
def actor_forward(x, prep, *, batch_tile=None, out_dtype=jnp.float32,
                  single_buffer_weights=False):
    """x: [B, num_states]; prep: output of prepare_actor_params."""
    dims = prep["dims"]
    ns, na = dims["num_states"], dims["num_actions"]
    hid_p, mid_p, act_p = dims["hidden_p"], dims["middle_p"], dims["num_actions_p"]

    w_dtype = prep["w1"].dtype
    x = jnp.asarray(x).astype(w_dtype)   # bf16 input -> half the per-tile DMA
    B = x.shape[0]
    assert x.shape[1] == ns

    tb = batch_tile if batch_tile is not None else _default_batch_tile(B)
    tb = max(16, _round_up(int(tb), 16))
    grid_b = pl.cdiv(B, tb)
    b_pad = grid_b * tb
    if b_pad != B:
        x = jnp.pad(x, ((0, b_pad - B), (0, 0)))

    def resident_spec(shape):
        # Weights/biases stay resident across the batch grid axis.  With
        # single_buffer_weights=True they are single-buffered, halving their
        # VMEM footprint (use when layer widths scale toward v7x's 64 MiB VMEM;
        # also raise vmem_limit_bytes in CompilerParams in that regime).
        kwargs = {}
        if single_buffer_weights:
            kwargs["pipeline_mode"] = pl.Buffered(1)
        return pl.BlockSpec(shape, lambda i: (0,) * len(shape), **kwargs)

    in_specs = [
        pl.BlockSpec((tb, ns), lambda i: (i, 0)),
        resident_spec((ns, hid_p)),    resident_spec((1, hid_p)),
        resident_spec((hid_p, mid_p)), resident_spec((1, mid_p)),
        resident_spec((mid_p, hid_p)), resident_spec((1, hid_p)),
        resident_spec((hid_p, act_p)), resident_spec((1, act_p)),
    ]
    out_specs = pl.BlockSpec((tb, act_p), lambda i: (i, 0))

    # Advisory scheduling hint: flops/bytes reflect the padded work actually
    # performed; transcendentals count only the useful sigmoids.
    flops = 2 * b_pad * (ns * hid_p + hid_p * mid_p + mid_p * hid_p + hid_p * act_p)
    bytes_accessed = (
        b_pad * ns * x.dtype.itemsize
        + sum(prep[k].size * prep[k].dtype.itemsize
              for k in ("w1", "b1", "w2", "b2", "w4", "b4", "w5", "b5"))
        + b_pad * act_p * jnp.dtype(out_dtype).itemsize)
    cost = pl.CostEstimate(flops=flops,
                           transcendentals=B * na,
                           bytes_accessed=bytes_accessed)

    out = pl.pallas_call(
        actor_kernel,
        out_shape=jax.ShapeDtypeStruct((b_pad, act_p), out_dtype),
        grid_spec=pltpu.PrefetchScalarGridSpec(
            num_scalar_prefetch=0,
            grid=(grid_b,),
            in_specs=in_specs,
            out_specs=out_specs,
        ),
        compiler_params=pltpu.CompilerParams(
            dimension_semantics=("parallel",)),
        cost_estimate=cost,
    )(x, prep["w1"], prep["b1"], prep["w2"], prep["b2"],
      prep["w4"], prep["b4"], prep["w5"], prep["b5"])

    return out[:B, :na]


# ---------------------------------------------------------------------------
# Synthetic init + references
# ---------------------------------------------------------------------------
def init_actor_params(key, num_states, num_actions, hidden, middle):
    """Deterministic synthetic init (nn.Linear shapes, stored transposed)."""
    ks = jax.random.split(key, 8)

    def linear(kw, kb, fan_in, fan_out):
        bound = 1.0 / jnp.sqrt(jnp.float32(fan_in))
        w = jax.random.uniform(kw, (fan_in, fan_out), jnp.float32, -bound, bound)
        b = jax.random.uniform(kb, (1, fan_out), jnp.float32, -bound, bound)
        return w, b

    w1, b1 = linear(ks[0], ks[1], num_states, hidden)
    w2, b2 = linear(ks[2], ks[3], hidden, middle)
    w4, b4 = linear(ks[4], ks[5], middle, hidden)
    w5, b5 = linear(ks[6], ks[7], hidden, num_actions)
    return dict(w1=w1, b1=b1, w2=w2, b2=b2, w4=w4, b4=b4, w5=w5, b5=b5)


def actor_reference_bf16(x, p):
    """Pure-JAX reference with the same bf16-operand / f32-accumulate scheme."""
    def dense(a, w, b):
        return jnp.dot(a.astype(jnp.bfloat16), w.astype(jnp.bfloat16),
                       preferred_element_type=jnp.float32) + b
    h = _leaky_relu(dense(x, p["w1"], p["b1"]))
    h = _leaky_relu(dense(h, p["w2"], p["b2"]))
    h = _leaky_relu(dense(h, p["w4"], p["b4"]))
    return jax.nn.sigmoid(dense(h, p["w5"], p["b5"]))


def actor_reference_f32(x, p):
    h = _leaky_relu(x @ p["w1"] + p["b1"])
    h = _leaky_relu(h @ p["w2"] + p["b2"])
    h = _leaky_relu(h @ p["w4"] + p["b4"])
    return jax.nn.sigmoid(h @ p["w5"] + p["b5"])


if __name__ == "__main__":
    # Small shapes consistent with Actor(num_states, num_actions, hidden, middle)
    B, num_states, num_actions, hidden, middle = 8, 32, 16, 64, 128

    key = jax.random.PRNGKey(0)
    kx, kp = jax.random.split(key)
    x = jax.random.normal(kx, (B, num_states), jnp.float32)
    raw = init_actor_params(kp, num_states, num_actions, hidden, middle)

    # One-time cast/pad of the parameters (hoisted out of the forward path).
    prep = prepare_actor_params(raw)

    out = jax.block_until_ready(actor_forward(x, prep))
    assert out.shape == (B, num_actions)

    ref_bf16 = actor_reference_bf16(x, raw)
    ref_f32 = actor_reference_f32(x, raw)
    assert jnp.allclose(out, ref_bf16, atol=1e-3, rtol=1e-3), "mismatch vs bf16 reference"
    assert jnp.allclose(out, ref_f32, atol=5e-2, rtol=5e-2), "mismatch vs f32 reference"

    # Multi-step grid with a non-divisible batch (cdiv grid + zero-padded last
    # tile): B=40 with 16-row tiles -> grid of 3 steps.
    x2 = jax.random.normal(jax.random.PRNGKey(1), (40, num_states), jnp.float32)
    out2 = jax.block_until_ready(actor_forward(x2, prep, batch_tile=16))
    assert out2.shape == (40, num_actions)
    assert jnp.allclose(out2, actor_reference_bf16(x2, raw), atol=1e-3, rtol=1e-3)

    print("KERNEL_OK")
</pallas_src>

<mosaic_0001>
module attributes {stable_mosaic.version = 11 : i64} {
  func.func @actor_kernel(%arg0: i32, %arg1: memref<16x32xbf16, #tpu.memory_space<vmem>>, %arg2: memref<32x128xbf16, #tpu.memory_space<vmem>>, %arg3: memref<1x128xf32, #tpu.memory_space<vmem>>, %arg4: memref<128x128xbf16, #tpu.memory_space<vmem>>, %arg5: memref<1x128xf32, #tpu.memory_space<vmem>>, %arg6: memref<128x128xbf16, #tpu.memory_space<vmem>>, %arg7: memref<1x128xf32, #tpu.memory_space<vmem>>, %arg8: memref<128x128xbf16, #tpu.memory_space<vmem>>, %arg9: memref<1x128xf32, #tpu.memory_space<vmem>>, %arg10: memref<16x128xf32, #tpu.memory_space<vmem>>) attributes {dimension_semantics = [#tpu.dimension_semantics<parallel>], iteration_bounds = array<i64: 1>, scalar_prefetch = 0 : i64, scratch_operands = 0 : i64, tpu.core_type = #tpu.core_type<tc>, window_params = [{transform_indices = @transform_0, window_bounds = array<i64: 16, 32>}, {pipeline_mode = #tpu.pipeline_mode<synchronous>, transform_indices = @transform_1, window_bounds = array<i64: 32, 128>}, {pipeline_mode = #tpu.pipeline_mode<synchronous>, transform_indices = @transform_2, window_bounds = array<i64: 1, 128>}, {pipeline_mode = #tpu.pipeline_mode<synchronous>, transform_indices = @transform_3, window_bounds = array<i64: 128, 128>}, {pipeline_mode = #tpu.pipeline_mode<synchronous>, transform_indices = @transform_4, window_bounds = array<i64: 1, 128>}, {pipeline_mode = #tpu.pipeline_mode<synchronous>, transform_indices = @transform_5, window_bounds = array<i64: 128, 128>}, {pipeline_mode = #tpu.pipeline_mode<synchronous>, transform_indices = @transform_6, window_bounds = array<i64: 1, 128>}, {pipeline_mode = #tpu.pipeline_mode<synchronous>, transform_indices = @transform_7, window_bounds = array<i64: 128, 128>}, {pipeline_mode = #tpu.pipeline_mode<synchronous>, transform_indices = @transform_8, window_bounds = array<i64: 1, 128>}, {transform_indices = @transform_9, window_bounds = array<i64: 16, 128>}]} {
    %c0 = arith.constant 0 : index
    %c0_0 = arith.constant 0 : index
    %0 = vector.load %arg1[%c0, %c0_0] : memref<16x32xbf16, #tpu.memory_space<vmem>>, vector<16x32xbf16>
    %c0_1 = arith.constant 0 : index
    %c0_2 = arith.constant 0 : index
    %1 = vector.load %arg2[%c0_1, %c0_2] : memref<32x128xbf16, #tpu.memory_space<vmem>>, vector<32x128xbf16>
    %cst = arith.constant dense<0.000000e+00> : vector<16x128xf32>
    %2 = tpu.matmul %0, %1, %cst {dimension_numbers = #tpu.dot_dimension_numbers<[1], [0], [0], [1], [0, 0, 1, 1], [], []>} : vector<16x32xbf16>, vector<32x128xbf16>, vector<16x128xf32> -> vector<16x128xf32>
    %c0_3 = arith.constant 0 : index
    %c0_4 = arith.constant 0 : index
    %3 = vector.load %arg3[%c0_3, %c0_4] : memref<1x128xf32, #tpu.memory_space<vmem>>, vector<1x128xf32>
    %4 = vector.broadcast %3 : vector<1x128xf32> to vector<16x128xf32>
    %5 = arith.addf %2, %4 : vector<16x128xf32>
    %cst_5 = arith.constant 0.000000e+00 : f32
    %6 = vector.broadcast %cst_5 : f32 to vector<16x128xf32>
    %7 = arith.cmpf ogt, %5, %6 : vector<16x128xf32>
    %cst_6 = arith.constant 0.00999999977 : f32
    %8 = vector.broadcast %cst_6 : f32 to vector<16x128xf32>
    %9 = arith.mulf %8, %5 : vector<16x128xf32>
    %10 = arith.select %7, %5, %9 : vector<16x128xi1>, vector<16x128xf32>
    %11 = arith.truncf %10 : vector<16x128xf32> to vector<16x128xbf16>
    %c0_7 = arith.constant 0 : index
    %c0_8 = arith.constant 0 : index
    %12 = vector.load %arg4[%c0_7, %c0_8] : memref<128x128xbf16, #tpu.memory_space<vmem>>, vector<128x128xbf16>
    %cst_9 = arith.constant dense<0.000000e+00> : vector<16x128xf32>
    %13 = tpu.matmul %11, %12, %cst_9 {dimension_numbers = #tpu.dot_dimension_numbers<[1], [0], [0], [1], [0, 0, 1, 1], [], []>} : vector<16x128xbf16>, vector<128x128xbf16>, vector<16x128xf32> -> vector<16x128xf32>
    %c0_10 = arith.constant 0 : index
    %c0_11 = arith.constant 0 : index
    %14 = vector.load %arg5[%c0_10, %c0_11] : memref<1x128xf32, #tpu.memory_space<vmem>>, vector<1x128xf32>
    %15 = vector.broadcast %14 : vector<1x128xf32> to vector<16x128xf32>
    %16 = arith.addf %13, %15 : vector<16x128xf32>
    %cst_12 = arith.constant 0.000000e+00 : f32
    %17 = vector.broadcast %cst_12 : f32 to vector<16x128xf32>
    %18 = arith.cmpf ogt, %16, %17 : vector<16x128xf32>
    %cst_13 = arith.constant 0.00999999977 : f32
    %19 = vector.broadcast %cst_13 : f32 to vector<16x128xf32>
    %20 = arith.mulf %19, %16 : vector<16x128xf32>
    %21 = arith.select %18, %16, %20 : vector<16x128xi1>, vector<16x128xf32>
    %22 = arith.truncf %21 : vector<16x128xf32> to vector<16x128xbf16>
    %c0_14 = arith.constant 0 : index
    %c0_15 = arith.constant 0 : index
    %23 = vector.load %arg6[%c0_14, %c0_15] : memref<128x128xbf16, #tpu.memory_space<vmem>>, vector<128x128xbf16>
    %cst_16 = arith.constant dense<0.000000e+00> : vector<16x128xf32>
    %24 = tpu.matmul %22, %23, %cst_16 {dimension_numbers = #tpu.dot_dimension_numbers<[1], [0], [0], [1], [0, 0, 1, 1], [], []>} : vector<16x128xbf16>, vector<128x128xbf16>, vector<16x128xf32> -> vector<16x128xf32>
    %c0_17 = arith.constant 0 : index
    %c0_18 = arith.constant 0 : index
    %25 = vector.load %arg7[%c0_17, %c0_18] : memref<1x128xf32, #tpu.memory_space<vmem>>, vector<1x128xf32>
    %26 = vector.broadcast %25 : vector<1x128xf32> to vector<16x128xf32>
    %27 = arith.addf %24, %26 : vector<16x128xf32>
    %cst_19 = arith.constant 0.000000e+00 : f32
    %28 = vector.broadcast %cst_19 : f32 to vector<16x128xf32>
    %29 = arith.cmpf ogt, %27, %28 : vector<16x128xf32>
    %cst_20 = arith.constant 0.00999999977 : f32
    %30 = vector.broadcast %cst_20 : f32 to vector<16x128xf32>
    %31 = arith.mulf %30, %27 : vector<16x128xf32>
    %32 = arith.select %29, %27, %31 : vector<16x128xi1>, vector<16x128xf32>
    %33 = arith.truncf %32 : vector<16x128xf32> to vector<16x128xbf16>
    %c0_21 = arith.constant 0 : index
    %c0_22 = arith.constant 0 : index
    %34 = vector.load %arg8[%c0_21, %c0_22] : memref<128x128xbf16, #tpu.memory_space<vmem>>, vector<128x128xbf16>
    %cst_23 = arith.constant dense<0.000000e+00> : vector<16x128xf32>
    %35 = tpu.matmul %33, %34, %cst_23 {dimension_numbers = #tpu.dot_dimension_numbers<[1], [0], [0], [1], [0, 0, 1, 1], [], []>} : vector<16x128xbf16>, vector<128x128xbf16>, vector<16x128xf32> -> vector<16x128xf32>
    %c0_24 = arith.constant 0 : index
    %c0_25 = arith.constant 0 : index
    %36 = vector.load %arg9[%c0_24, %c0_25] : memref<1x128xf32, #tpu.memory_space<vmem>>, vector<1x128xf32>
    %37 = vector.broadcast %36 : vector<1x128xf32> to vector<16x128xf32>
    %38 = arith.addf %35, %37 : vector<16x128xf32>
    %39 = arith.negf %38 : vector<16x128xf32>
    %40 = math.exp %39 : vector<16x128xf32>
    %cst_26 = arith.constant 1.000000e+00 : f32
    %41 = vector.broadcast %cst_26 : f32 to vector<16x128xf32>
    %42 = arith.addf %41, %40 : vector<16x128xf32>
    %43 = arith.divf %41, %42 : vector<16x128xf32>
    %c0_27 = arith.constant 0 : index
    %c0_28 = arith.constant 0 : index
    %44 = vector.load %arg10[%c0_27, %c0_28] : memref<16x128xf32, #tpu.memory_space<vmem>>, vector<16x128xf32>
    tpu.vector_store %arg10[%c0_27, %c0_28], %43 {strides = array<i32>} : memref<16x128xf32, #tpu.memory_space<vmem>>, vector<16x128xf32>,
    return
  }
  func.func @transform_0(%arg0: i32) -> (i32, i32) {
    %c0_i32 = arith.constant 0 : i32
    %c0_i32_0 = arith.constant 0 : i32
    return %arg0, %c0_i32 : i32, i32
  }
  func.func @transform_1(%arg0: i32) -> (i32, i32) {
    %c0_i32 = arith.constant 0 : i32
    %c0_i32_0 = arith.constant 0 : i32
    %c0_i32_1 = arith.constant 0 : i32
    return %c0_i32, %c0_i32_0 : i32, i32
  }
  func.func @transform_2(%arg0: i32) -> (i32, i32) {
    %c0_i32 = arith.constant 0 : i32
    %c0_i32_0 = arith.constant 0 : i32
    %c0_i32_1 = arith.constant 0 : i32
    return %c0_i32, %c0_i32_0 : i32, i32
  }
  func.func @transform_3(%arg0: i32) -> (i32, i32) {
    %c0_i32 = arith.constant 0 : i32
    %c0_i32_0 = arith.constant 0 : i32
    %c0_i32_1 = arith.constant 0 : i32
    return %c0_i32, %c0_i32_0 : i32, i32
  }
  func.func @transform_4(%arg0: i32) -> (i32, i32) {
    %c0_i32 = arith.constant 0 : i32
    %c0_i32_0 = arith.constant 0 : i32
    %c0_i32_1 = arith.constant 0 : i32
    return %c0_i32, %c0_i32_0 : i32, i32
  }
  func.func @transform_5(%arg0: i32) -> (i32, i32) {
    %c0_i32 = arith.constant 0 : i32
    %c0_i32_0 = arith.constant 0 : i32
    %c0_i32_1 = arith.constant 0 : i32
    return %c0_i32, %c0_i32_0 : i32, i32
  }
  func.func @transform_6(%arg0: i32) -> (i32, i32) {
    %c0_i32 = arith.constant 0 : i32
    %c0_i32_0 = arith.constant 0 : i32
    %c0_i32_1 = arith.constant 0 : i32
    return %c0_i32, %c0_i32_0 : i32, i32
  }
  func.func @transform_7(%arg0: i32) -> (i32, i32) {
    %c0_i32 = arith.constant 0 : i32
    %c0_i32_0 = arith.constant 0 : i32
    %c0_i32_1 = arith.constant 0 : i32
    return %c0_i32, %c0_i32_0 : i32, i32
  }
  func.func @transform_8(%arg0: i32) -> (i32, i32) {
    %c0_i32 = arith.constant 0 : i32
    %c0_i32_0 = arith.constant 0 : i32
    %c0_i32_1 = arith.constant 0 : i32
    return %c0_i32, %c0_i32_0 : i32, i32
  }
  func.func @transform_9(%arg0: i32) -> (i32, i32) {
    %c0_i32 = arith.constant 0 : i32
    %c0_i32_0 = arith.constant 0 : i32
    return %arg0, %c0_i32 : i32, i32
  }
}

</mosaic_0001>

<bundles_post_ra>
// kernel: tpu_custom_call.1
= control target key start
LH: loop header
LB: loop body
LE: loop exit
PB: predicated region body
PF: predicated region fallthrough
CT: control target
= control target key end

     0   :  { %14 = vsyncpa [#allocation3], 0  ;;  %s887_s0 = inlined_call_operand.hbm [shape: bf16[16,32], index: 0, kind: input, shape index: {}]   ;;  %s888_s1 = inlined_call_operand.hbm [shape: bf16[32,128], index: 1, kind: input, shape index: {}]   ;;  %s889_s2 = inlined_call_operand.vmem [shape: f32[1,128], index: 2, kind: input, shape index: {}]   ;;  %s890_s3 = inlined_call_operand.hbm [shape: bf16[128,128], index: 3, kind: input, shape index: {}]   ;;  %s891_s4 = inlined_call_operand.vmem [shape: f32[1,128], index: 4, kind: input, shape index: {}]   ;;  %s892_s5 = inlined_call_operand.hbm [shape: bf16[128,128], index: 5, kind: input, shape index: {}]   ;;  %s893_s6 = inlined_call_operand.vmem [shape: f32[1,128], index: 6, kind: input, shape index: {}]   ;;  %s894_s7 = inlined_call_operand.hbm [shape: bf16[128,128], index: 7, kind: input, shape index: {}]   ;;  %s895_s8 = inlined_call_operand.vmem [shape: f32[1,128], index: 8, kind: input, shape index: {}]   ;;  %s896_s9 = inlined_call_operand.hbm [shape: f32[16,128], index: 9, kind: output, shape index: {}]  }
   0x1   :  { %15 = vsyncpa [#allocation6], 0 }
   0x2   :  { %16 = vsyncpa [#allocation9], 0 }
   0x3   :  { %17 = vsyncpa [#allocation4], 0  ;;  %s35_s11 = sshll.u32 %s888_s1, 4  ;;  %s797_s12 = smov [#allocation5]   ;;  %s36_s11 = int_to_ptr.hbm [resolvable:$true] %s35_s11 }
   0x4   :  { %s37_s13 = sshll.u32 %s797_s12, 4  ;;  %s65_s16 = sshll.u32 %s892_s5, 4  ;;  %s38_s13 = int_to_ptr.vmem [resolvable:$true] %s37_s13  ;;  %s66_s16 = int_to_ptr.hbm [resolvable:$true] %s65_s16 }
   0x5   :  { %s798_s17 = smov 64   ;;  %s799_s18 = smov 4  }
   0x6   :  { %43 = dma.hbm_to_vmem [thread:$0]  %s36_s11, 256, %s38_s13, [#allocation6], %s798_s17, %s798_s17, %s799_s18  }
   0x7   :  { %s800_s19 = smov [#allocation8]   ;;  %s22_s23 = sshll.u32 %s887_s0, 4  ;;  %s23_s23 = int_to_ptr.hbm [resolvable:$true] %s22_s23 }
   0x8   :  { %s67_s20 = sshll.u32 %s800_s19, 4  ;;  %s50_s25 = sshll.u32 %s890_s3, 4  ;;  %s68_s20 = int_to_ptr.vmem [resolvable:$true] %s67_s20  ;;  %s51_s25 = int_to_ptr.hbm [resolvable:$true] %s50_s25 }
   0x9   :  { %73 = dma.hbm_to_vmem [thread:$0]  %s66_s16, 1024, %s68_s20, [#allocation9], %s798_s17, %s798_s17, %s799_s18  }
   0xa   :  { %s801_s26 = smov [#allocation2]   ;;  %s802_s5 = smov [#allocation7]  }
   0xb   :  { %s24_s27 = sshll.u32 %s801_s26, 4  ;;  %s52_s28 = sshll.u32 %s802_s5, 4  ;;  %s25_s27 = int_to_ptr.vmem [resolvable:$true] %s24_s27  ;;  %s53_s28 = int_to_ptr.vmem [resolvable:$true] %s52_s28 }
   0xc   :  { %30 = dma.hbm_to_vmem [thread:$0]  %s23_s23, 128, %s25_s27, [#allocation3], %s798_s17, %s798_s17, %s799_s18  }
   0xd   :  { %s80_s10 = sshll.u32 %s894_s7, 4  ;;  %s803_s0 = smov [#allocation10]   ;;  %s81_s10 = int_to_ptr.hbm [resolvable:$true] %s80_s10 }
   0xe   :  { %58 = dma.hbm_to_vmem [thread:$0]  %s51_s25, 1024, %s53_s28, [#allocation6], %s798_s17, %s798_s17, %s799_s18  }
   0xf   :  { %s82_s11 = sshll.u32 %s803_s0, 4  ;;  %s83_s11 = int_to_ptr.vmem [resolvable:$true] %s82_s11 }
  0x10   :  { %88 = dma.hbm_to_vmem [thread:$0]  %s81_s10, 1024, %s83_s11, [#allocation9], %s798_s17, %s798_s17, %s799_s18  }
  0x11   :  { %789 = dma.done.wait [#allocation3], 128  }
  0x12   :  { %790 = vsyncadd [#allocation3], 4294967168 }
  0x13   :  { %791 = dma.done.wait [#allocation6], 1280  }
  0x14   :  { %792 = vsyncadd [#allocation6], 4294966016 }
  0x15   :  { %793 = dma.done.wait [#allocation9], 2048  }
  0x16   :  { %794 = vsyncadd [#allocation9], 4294965248  ;;  %v598_v0 = vld [vmem:[#allocation5 + $0x8] sm:$0xff]  ;;  %v597_v2 = vld [vmem:[#allocation5] sm:$0xff]  ;;  %vm139_vm0 = vcmask 261120   ;;  %s470_s18 = sshll.u32 %s896_s9, 4  ;;  %s471_s18 = int_to_ptr.hbm [resolvable:$true] %s470_s18 }
  0x17   :  { %v606_v1 = vld [vmem:[#allocation7 + $0x38] sm:$0xff]  ;;  %149 = vmatpush.bf16.msra.mxu0 %v598_v0  ;;  %v605_v3 = vld [vmem:[#allocation7 + $0x30] sm:$0xff]  ;;  %v596_v4 = vld [vmem:[#allocation2] sm:$0xff]  ;;  %s805_s19 = smov 128   ;;  %s806_s20 = smov 8  }
  0x18   :  { %232 = vmatpush.bf16.msra.mxu1 %v606_v1  ;;  %v604_v5 = vld [vmem:[#allocation7 + $0x28] sm:$0xff]  ;;  %v603_v6 = vld [vmem:[#allocation7 + $0x20] sm:$0xff]  ;;  %v602_v7 = vld [vmem:[#allocation7 + $0x18] sm:$0xff] }
  0x19   :  { %v601_v8 = vld [vmem:[#allocation7 + $0x10] sm:$0xff]  ;;  %v600_v9 = vld [vmem:[#allocation7 + $0x8] sm:$0xff]  ;;  %v599_v10 = vld [vmem:[#allocation7] sm:$0xff] }
  0x1a   :  { %v614_v11 = vld [vmem:[#allocation8 + $0x38] sm:$0xff]  ;;  %v613_v12 = vld [vmem:[#allocation8 + $0x30] sm:$0xff]  ;;  %v612_v13 = vld [vmem:[#allocation8 + $0x28] sm:$0xff] }
  0x1b   :  { %150 = vmatpush.bf16.msra.mxu0 %v597_v2  ;;  %321 = vmatpush.bf16.msra.mxu2 %v614_v11  ;;  %v611_v14 = vld [vmem:[#allocation8 + $0x20] sm:$0xff]  ;;  %v633_v16 = vld [vmem:[%s889_s2] ss:$0 sm:$0xff]  ;;  %v610_v25 = vld [vmem:[#allocation8 + $0x18] sm:$0xff] }
  0x1c   :  { %233 = vmatpush.bf16.msra.mxu1 %v605_v3  ;;  %v609_v26 = vld [vmem:[#allocation8 + $0x10] sm:$0xff]  ;;  %v608_v27 = vld [vmem:[#allocation8 + $0x8] sm:$0xff]  ;;  %v607_v28 = vld [vmem:[#allocation8] sm:$0xff] }
  0x1d   :  { %v622_v29 = vld [vmem:[#allocation10 + $0x38] sm:$0xff]  ;;  %v621_v30 = vld [vmem:[#allocation10 + $0x30] sm:$0xff]  ;;  %v620_v31 = vld [vmem:[#allocation10 + $0x28] sm:$0xff] }
  0x1e   :  { %497 = vmatmul.msk.bf16.vlgmr.msra.gmra.mxu0 %vm139_vm0, %v596_v4  ;;  %410 = vmatpush.bf16.msra.mxu3 %v622_v29  ;;  %v619_v32 = vld [vmem:[#allocation10 + $0x20] sm:$0xff]  ;;  %v634_v34 = vld [vmem:[%s891_s4] ss:$0 sm:$0xff]  ;;  %v618_v43 = vld [vmem:[#allocation10 + $0x18] sm:$0xff] }
  0x1f   :  { %322 = vmatpush.bf16.msra.mxu2 %v613_v12  ;;  %v617_v44 = vld [vmem:[#allocation10 + $0x10] sm:$0xff]  ;;  %v616_v45 = vld [vmem:[#allocation10 + $0x8] sm:$0xff]  ;;  %v615_v46 = vld [vmem:[#allocation10] sm:$0xff] }
  0x20   :  { %234 = vmatpush.bf16.msra.mxu1 %v604_v5  ;;  %v635_v48 = vld [vmem:[%s893_s6] ss:$0 sm:$0xff]  ;;  %s804_s6 = smov [#allocation11]  }
  0x21   :  { %v636_v57 = vld [vmem:[%s895_s8] ss:$0 sm:$0xff]  ;;  %s468_s8 = sshll.u32 %s804_s6, 4  ;;  %s469_s8 = int_to_ptr.vmem [resolvable:$true] %s468_s8 }
  0x22   :  { %411 = vmatpush.bf16.msra.mxu3 %v621_v30 }
  0x23   :  { %323 = vmatpush.bf16.msra.mxu2 %v612_v13 }
  0x24   :  { %235 = vmatpush.bf16.msra.mxu1 %v603_v6 }
  0x26   :  { %412 = vmatpush.bf16.msra.mxu3 %v620_v31 }
  0x27   :  { %324 = vmatpush.bf16.msra.mxu2 %v611_v14 }
  0x28   :  { %236 = vmatpush.bf16.msra.mxu1 %v602_v7 }
  0x2a   :  { %413 = vmatpush.bf16.msra.mxu3 %v619_v32 }
  0x2b   :  { %325 = vmatpush.bf16.msra.mxu2 %v610_v25 }
  0x2c   :  { %237 = vmatpush.bf16.msra.mxu1 %v601_v8 }
  0x2e   :  { %414 = vmatpush.bf16.msra.mxu3 %v618_v43 }
  0x2f   :  { %326 = vmatpush.bf16.msra.mxu2 %v609_v26 }
  0x30   :  { %238 = vmatpush.bf16.msra.mxu1 %v600_v9 }
  0x32   :  { %415 = vmatpush.bf16.msra.mxu3 %v617_v44 }
  0x33   :  { %327 = vmatpush.bf16.msra.mxu2 %v608_v27 }
  0x34   :  { %239 = vmatpush.bf16.msra.mxu1 %v599_v10 }
  0x36   :  { %416 = vmatpush.bf16.msra.mxu3 %v616_v45 }
  0x37   :  { %328 = vmatpush.bf16.msra.mxu2 %v607_v28 }
  0x3a   :  { %417 = vmatpush.bf16.msra.mxu3 %v615_v46 }
  0x9b   :  { %v152_v15 = vpop.f32.mrf.mxu0 }
  0x9c   :  { %v153_v17 = vadd.f32 %v633_v16, %v152_v15 }
  0x9e   :  { %v159_v19 = vmul.f32 0.01, %v153_v17  ;;  %vm157_vm1 = vcmp.gt.f32.partialorder %v153_v17, 0.0 }
  0xa0   :  { %v161_v22 = vsel %vm157_vm1, %v153_v17, %v159_v19 }
  0xa3   :  { %v154_v18 = vpop.f32.mrf.mxu0 }
  0xa4   :  { %v155_v20 = vadd.f32 %v633_v16, %v154_v18 }
  0xa6   :  { %v160_v21 = vmul.f32 0.01, %v155_v20  ;;  %vm158_vm2 = vcmp.gt.f32.partialorder %v155_v20, 0.0 }
  0xa8   :  { %v162_v23 = vsel %vm158_vm2, %v155_v20, %v160_v21 }
  0xa9   :  { %v163_v24 = vpack.c.bf16 %v162_v23, %v161_v22 }
  0xab   :  { %240 = vmatmul.bf16.vlgmr.msra.gmra.mxu1 %v163_v24 }
 0x128   :  { %v241_v33 = vpop.f32.mrf.mxu1 }
 0x129   :  { %v242_v35 = vadd.f32 %v634_v34, %v241_v33 }
 0x12b   :  { %v248_v37 = vmul.f32 0.01, %v242_v35  ;;  %vm246_vm3 = vcmp.gt.f32.partialorder %v242_v35, 0.0 }
 0x12d   :  { %v250_v40 = vsel %vm246_vm3, %v242_v35, %v248_v37 }
 0x130   :  { %v243_v36 = vpop.f32.mrf.mxu1 }
 0x131   :  { %v244_v38 = vadd.f32 %v634_v34, %v243_v36 }
 0x133   :  { %v249_v39 = vmul.f32 0.01, %v244_v38  ;;  %vm247_vm4 = vcmp.gt.f32.partialorder %v244_v38, 0.0 }
 0x135   :  { %v251_v41 = vsel %vm247_vm4, %v244_v38, %v249_v39 }
 0x136   :  { %v252_v42 = vpack.c.bf16 %v251_v41, %v250_v40 }
 0x138   :  { %329 = vmatmul.bf16.vlgmr.msra.gmra.mxu2 %v252_v42 }
 0x1bb   :  { %v330_v47 = vpop.f32.mrf.mxu2 }
 0x1bc   :  { %v331_v49 = vadd.f32 %v635_v48, %v330_v47 }
 0x1be   :  { %v337_v51 = vmul.f32 0.01, %v331_v49  ;;  %vm335_vm5 = vcmp.gt.f32.partialorder %v331_v49, 0.0 }
 0x1c0   :  { %v339_v54 = vsel %vm335_vm5, %v331_v49, %v337_v51 }
 0x1c3   :  { %v332_v50 = vpop.f32.mrf.mxu2 }
 0x1c4   :  { %v333_v52 = vadd.f32 %v635_v48, %v332_v50 }
 0x1c6   :  { %v338_v53 = vmul.f32 0.01, %v333_v52  ;;  %vm336_vm6 = vcmp.gt.f32.partialorder %v333_v52, 0.0 }
 0x1c8   :  { %v340_v55 = vsel %vm336_vm6, %v333_v52, %v338_v53 }
 0x1c9   :  { %v341_v56 = vpack.c.bf16 %v340_v55, %v339_v54 }
 0x1cb   :  { %418 = vmatmul.bf16.vlgmr.msra.gmra.mxu3 %v341_v56 }
 0x24e   :  { %v419_v58 = vpop.f32.mrf.mxu3 }
 0x24f   :  { %v420_v59 = vadd.f32 %v636_v57, %v419_v58 }
 0x251   :  { %v594_v60 = vmul.f32 -1.442695, %v420_v59 }
 0x253   :  { %637 = vpow2.f32 %v594_v60 }
 0x256   :  { %v421_v61 = vpop.f32.mrf.mxu3 }
 0x257   :  { %v422_v62 = vadd.f32 %v636_v57, %v421_v61 }
 0x259   :  { %v638_v63 = vpop.eup %637  ;;  %v595_v0 = vmul.f32 -1.442695, %v422_v62 }
 0x25a   :  { %v430_v1 = vadd.f32 1.0, %v638_v63 }
 0x25b   :  { %639 = vpow2.f32 %v595_v0 }
 0x25c   :  { %641 = vrcp.f32 %v430_v1  ;;  %v443_v7 = vand.u32 2147483648, %v430_v1  ;;  %v441_v9 = vand.u32 2147483647, %v430_v1  ;;  %vm437_vm8 = vweird.f32 %v430_v1 }
 0x25e   :  { %v444_v12 = vor.u32 1.1754944e-38, %v443_v7  ;;  %vm442_vm10 = vcmp.eq.f32.partialorder %v441_v9, 8.507059e+37 }
 0x261   :  { %v640_v2 = vpop.eup %639 }
 0x262   :  { %v642_v3 = vpop.eup %641  ;;  %v431_v4 = vadd.f32 1.0, %v640_v2 }
 0x263   :  { %v433_v5 = vmul.f32 %v642_v3, %v430_v1  ;;  %vm438_vm7 = vweird.f32 %v642_v3 }
 0x264   :  { %643 = vrcp.f32 %v431_v4  ;;  %vm439_vm9 = vmor %vm437_vm8, %vm438_vm7  ;;  %v458_v17 = vand.u32 2147483648, %v431_v4  ;;  %v456_v19 = vand.u32 2147483647, %v431_v4  ;;  %vm452_vm12 = vweird.f32 %v431_v4 }
 0x265   :  { %v434_v6 = vsub.f32 1.0, %v433_v5 }
 0x266   :  { %v459_v21 = vor.u32 1.1754944e-38, %v458_v17  ;;  %vm457_vm14 = vcmp.eq.f32.partialorder %v456_v19, 8.507059e+37 }
 0x267   :  { %v435_v8 = vmul.f32 %v642_v3, %v434_v6 }
 0x269   :  { %v436_v10 = vadd.f32 %v642_v3, %v435_v8 }
 0x26a   :  { %v644_v11 = vpop.eup %643 }
 0x26b   :  { %v448_v13 = vmul.f32 %v644_v11, %v431_v4  ;;  %v440_v14 = vsel %vm439_vm9, %v642_v3, %v436_v10  ;;  %vm453_vm11 = vweird.f32 %v644_v11 }
 0x26c   :  { %v445_v15 = vsel %vm442_vm10, %v444_v12, %v440_v14  ;;  %vm454_vm13 = vmor %vm452_vm12, %vm453_vm11 }
 0x26d   :  { %v449_v16 = vsub.f32 1.0, %v448_v13  ;;  %462 = vst [vmem:[#allocation11] sm:$0xff] %v445_v15 }
 0x26f   :  { %v450_v18 = vmul.f32 %v644_v11, %v449_v16 }
 0x271   :  { %v451_v20 = vadd.f32 %v644_v11, %v450_v18 }
 0x273   :  { %v455_v22 = vsel %vm454_vm13, %v644_v11, %v451_v20 }
 0x274   :  { %v460_v23 = vsel %vm457_vm14, %v459_v21, %v455_v22 }
 0x275   :  { %463 = vst [vmem:[#allocation11 + $0x8] sm:$0xff] %v460_v23 }
 0x276   :  { %476 = dma.vmem_to_hbm [thread:$0]  %s469_s8, 256, %s471_s18, [#allocation4], %s805_s19, %s805_s19, %s806_s20  }
 0x277   :  { %795 = dma.done.wait [#allocation4], 256  }
 0x278   :  { %796 = vsyncadd [#allocation4], 4294967040 }
 0x279   :  { %481 = vsyncpa [#allocation3], 1 }
 0x27a   :  { %482 = vsyncpa [#allocation6], 1 }
 0x27b   :  { %483 = vsyncpa [#allocation9], 1 }
 0x27c   :  { %484 = vsyncpa [#allocation4], 1 }

</bundles_post_ra>
